<compile_context>
chip_gen: v5e
topology: v5e:2x2
jax: 0.10.0
libtpu: 0.0.40
codegen_flags: <defaults>
</compile_context>

<pallas_src>
import jax
import jax.numpy as jnp
from jax import lax
from jax.experimental import pallas as pl
from jax.experimental.pallas import tpu as pltpu

D = 128                    # d_transformer == latent_dim
POSE6D = 16 * 6            # 96
NSHAPE = 10
HEADS_PAD = 128            # pose(96) | shape(10) | zero-pad(22) -> lane-dense 128
NPOINTS_PER_LAYER = (32, 24, 16, 8)   # scaled-down analogue of [778, 512, 389, 256]
TM_FC = 512                # fc_begin row tile (HBM-bound; 512 ~ roofline plateau)
KPAD = 8                   # Linear(3->D) contraction zero-padded to 8 for a single MXU pass


# --------------------------- Pallas kernels ---------------------------------

def _fc_begin_kernel(x_ref, w1_ref, b1_ref, w2_ref, b2_ref, o_ref):
    """Encoder fc_begin: Linear(3->D) -> ReLU -> Linear(D->D), applied per point.

    The K=3 layer is zero-padded to K=8 and runs as one [tm,8]x[8,D] MXU pass
    (no per-tile cross-lane broadcasts); the DxD layer uses bf16 inputs with f32
    accumulation.  Features are stored as bf16 (halves the dominant HBM writeback;
    the consumer casts to bf16 anyway).
    """
    h = jnp.dot(x_ref[...], w1_ref[...],
                preferred_element_type=jnp.float32) + b1_ref[...]
    h = jnp.maximum(h, 0.0)
    y = jnp.dot(h.astype(jnp.bfloat16), w2_ref[...],
                preferred_element_type=jnp.float32) + b2_ref[...]
    o_ref[...] = y.astype(o_ref.dtype)


def _heads_reparam_kernel(f_ref, eps_ref, wml_ref, bml_ref,
                          mean_ref, logvar_ref, g_ref):
    """Fused fc2_mean|fc2_logvar heads + reparameterization + per-batch max-pool.

    Runs once per batch element (grid=(B,), "parallel"): one lane-dense [D, 2D]
    matmul produces mean|logvar, z = mean + eps * exp(0.5*logvar) stays in VMEM,
    and only its max over the point axis (the decoder's global feature) is written.
    """
    f = f_ref[0]                                                  # [P, D] bf16
    ml = (jnp.dot(f, wml_ref[...], preferred_element_type=jnp.float32)
          + bml_ref[...])                                         # [P, 2D] f32
    mean = ml[:, :D]
    logvar = ml[:, D:]
    mean_ref[0] = mean
    logvar_ref[0] = logvar
    z = mean + eps_ref[0] * jnp.exp(0.5 * logvar)                 # [P, D]
    g_ref[0] = jnp.max(z, axis=0, keepdims=True)                  # [1, D]


def _decoder_kernel(g_ref, w1_ref, b1_ref, ga1_ref, be1_ref,
                    w2_ref, b2_ref, ga2_ref, be2_ref,
                    w3_ref, b3_ref, ga3_ref, be3_ref,
                    wh_ref, bh_ref, heads_ref):
    """Decoder MLP on the [B, D] global feature: 3 x (Linear + BatchNorm(train) +
    LeakyReLU(0.2)), then the fused pose_reg|shape_reg head (lane-padded to 128)."""

    def bn_lrelu(h, gamma, beta):
        # nn.BatchNorm1d default (training) mode: biased batch statistics, f32.
        mu = jnp.mean(h, axis=0, keepdims=True)
        var = jnp.mean((h - mu) ** 2, axis=0, keepdims=True)
        hn = (h - mu) * lax.rsqrt(var + 1e-5) * gamma + beta
        return jnp.where(hn >= 0.0, hn, 0.2 * hn)

    h = jnp.dot(g_ref[...].astype(jnp.bfloat16), w1_ref[...],
                preferred_element_type=jnp.float32) + b1_ref[...]
    h = bn_lrelu(h, ga1_ref[...], be1_ref[...])
    h = jnp.dot(h.astype(jnp.bfloat16), w2_ref[...],
                preferred_element_type=jnp.float32) + b2_ref[...]
    h = bn_lrelu(h, ga2_ref[...], be2_ref[...])
    h = jnp.dot(h.astype(jnp.bfloat16), w3_ref[...],
                preferred_element_type=jnp.float32) + b3_ref[...]
    h = bn_lrelu(h, ga3_ref[...], be3_ref[...])
    heads_ref[...] = (jnp.dot(h.astype(jnp.bfloat16), wh_ref[...],
                              preferred_element_type=jnp.float32) + bh_ref[...])


# --------------------------- wrappers ----------------------------------------

def fc_begin(x, p):
    B, N, _ = x.shape
    M = B * N
    if M >= TM_FC:
        tm = TM_FC
    else:
        tm = max(8, -(-M // 8) * 8)           # single block, sublane-aligned
    Mpad = -(-M // tm) * tm                    # ceil to a multiple of tm
    xf = x.reshape(M, 3)
    xf = jnp.pad(xf, ((0, Mpad - M), (0, KPAD - 3)))   # rows -> tm multiple, K -> 8
    out = pl.pallas_call(
        _fc_begin_kernel,
        out_shape=jax.ShapeDtypeStruct((Mpad, D), jnp.bfloat16),
        grid=(Mpad // tm,),
        in_specs=[
            pl.BlockSpec((tm, KPAD), lambda i: (i, 0)),
            pl.BlockSpec((KPAD, D), lambda i: (0, 0)),
            pl.BlockSpec((1, D), lambda i: (0, 0)),
            pl.BlockSpec((D, D), lambda i: (0, 0)),
            pl.BlockSpec((1, D), lambda i: (0, 0)),
        ],
        out_specs=pl.BlockSpec((tm, D), lambda i: (i, 0)),
        compiler_params=pltpu.CompilerParams(dimension_semantics=("parallel",)),
    )(xf, p["w1_8"], p["b1"], p["w2_bf"], p["b2"])
    if Mpad != M:
        out = out[:M]
    return out.reshape(B, N, D)


def heads_reparam(feats, eps, p):
    """feats: [B, P, D] bf16, eps: [B, P, D] f32 -> (mean, logvar, g[B, D])."""
    B, P, Dd = feats.shape
    mean, logvar, g = pl.pallas_call(
        _heads_reparam_kernel,
        out_shape=(jax.ShapeDtypeStruct((B, P, Dd), jnp.float32),
                   jax.ShapeDtypeStruct((B, P, Dd), jnp.float32),
                   jax.ShapeDtypeStruct((B, 1, Dd), jnp.float32)),
        grid=(B,),
        in_specs=[
            pl.BlockSpec((1, P, Dd), lambda b: (b, 0, 0)),
            pl.BlockSpec((1, P, Dd), lambda b: (b, 0, 0)),
            pl.BlockSpec((Dd, 2 * Dd), lambda b: (0, 0)),
            pl.BlockSpec((1, 2 * Dd), lambda b: (0, 0)),
        ],
        out_specs=(
            pl.BlockSpec((1, P, Dd), lambda b: (b, 0, 0)),
            pl.BlockSpec((1, P, Dd), lambda b: (b, 0, 0)),
            pl.BlockSpec((1, 1, Dd), lambda b: (b, 0, 0)),
        ),
        compiler_params=pltpu.CompilerParams(dimension_semantics=("parallel",)),
    )(feats, eps, p["wml_bf"], p["bml"])
    return mean, logvar, g.reshape(B, Dd)


def _full_spec(shape):
    zeros = (0,) * len(shape)
    return pl.BlockSpec(shape, lambda i, _z=zeros: _z)


def decoder_mlp(g, p):
    B, _ = g.shape
    args = (g, p["w1_bf"], p["b1"], p["g1"], p["be1"],
            p["w2_bf"], p["b2"], p["g2"], p["be2"],
            p["w3_bf"], p["b3"], p["g3"], p["be3"],
            p["wh_bf"], p["bh"])
    heads = pl.pallas_call(
        _decoder_kernel,
        out_shape=jax.ShapeDtypeStruct((B, HEADS_PAD), jnp.float32),
        grid=(1,),
        in_specs=[_full_spec(a.shape) for a in args],
        out_specs=_full_spec((B, HEADS_PAD)),
        compiler_params=pltpu.CompilerParams(dimension_semantics=("arbitrary",)),
    )(*args)
    pose6d = heads[:, :POSE6D]
    mano_shape = heads[:, POSE6D:POSE6D + NSHAPE]
    return pose6d, mano_shape


# --------------------------- small JAX glue -----------------------------------

def rot6d2mat(x):
    """x: [N, 6] -> rotation matrices [N, 3, 3] (Zhou et al. 6D rep, columns b1,b2,b3)."""
    a1, a2 = x[:, 0:3], x[:, 3:6]
    b1 = a1 / (jnp.linalg.norm(a1, axis=-1, keepdims=True) + 1e-8)
    b2 = a2 - jnp.sum(b1 * a2, axis=-1, keepdims=True) * b1
    b2 = b2 / (jnp.linalg.norm(b2, axis=-1, keepdims=True) + 1e-8)
    b3 = jnp.cross(b1, b2)
    return jnp.stack([b1, b2, b3], axis=-1)


def mat2aa(R):
    """R: [N, 3, 3] -> axis-angle [N, 3]."""
    trace = R[:, 0, 0] + R[:, 1, 1] + R[:, 2, 2]
    cos = jnp.clip((trace - 1.0) * 0.5, -1.0, 1.0)
    angle = jnp.arccos(cos)
    r = jnp.stack([R[:, 2, 1] - R[:, 1, 2],
                   R[:, 0, 2] - R[:, 2, 0],
                   R[:, 1, 0] - R[:, 0, 1]], axis=-1)
    sin = jnp.sin(angle)
    scale = jnp.where(sin > 1e-6, angle / (2.0 * sin + 1e-12), 0.5)
    return r * scale[:, None]


def vae_forward(params, x, key):
    B = x.shape[0]
    P = NPOINTS_PER_LAYER[-1]
    # ----------------------------- encoder -----------------------------------
    # TODO(synk): TransitionDown (farthest-point-sampling + kNN pooling), ElementwiseMLP
    # and TransformerBlock are not defined in the provided source; downsampling is
    # approximated by keeping the first P points.  Doing the slice BEFORE fc_begin
    # avoids spending per-point compute / HBM writeback on points that are discarded.
    x = x[:, :P, :]
    feats = fc_begin(x, params["enc"]["fc_begin"])               # [B, P, D] bf16
    # reparameterization noise (torch.randn_like equivalent), generated outside the
    # kernel so the script also runs in interpret mode (no hardware-PRNG lowering).
    eps = jax.random.normal(key, (B, P, D), jnp.float32)
    mean, logvar, g = heads_reparam(feats, eps, params["enc"]["heads"])
    # ----------------------------- decoder -----------------------------------
    pose6d, mano_shape = decoder_mlp(g, params["dec"])
    # NOTE: reference VAE.forward unpacks a 3rd value ("trans") that the encoder never
    # returns (bug in the reference); we return None for it.
    trans = None
    rotmat = rot6d2mat(pose6d.reshape(-1, 6)).reshape(B, 16, 3, 3)
    mano_pose_aa = mat2aa(rotmat.reshape(-1, 3, 3)).reshape(B, 16 * 3)
    # TODO(synk): MANO layer (pred_verts / pred_joints) requires the MANO model assets
    # (shape blendshapes, joint regressor, template mesh) which cannot be built in-script.
    pred_mano_results = {
        "verts3d": None,
        "joints3d": None,
        "mano_shape": mano_shape,
        "mano_pose": rotmat,
        "mano_pose_aa": mano_pose_aa,
    }
    return pred_mano_results, mean, logvar, trans


# --------------------------- parameter init -----------------------------------

def _linear(key, fin, fout):
    kw, kb = jax.random.split(key)
    w = jax.random.normal(kw, (fin, fout), jnp.float32) * (1.0 / jnp.sqrt(fin))
    b = jax.random.normal(kb, (1, fout), jnp.float32) * 0.01
    return w, b


def init_params(key):
    """Raw module parameters + one-time preprocessing (weight fusion / bf16 casts /
    K-padding), so no concat/cast re-runs on every forward call."""
    keys = jax.random.split(key, 9)
    w1, b1 = _linear(keys[0], 3, D)
    w2, b2 = _linear(keys[1], D, D)
    wm, bm = _linear(keys[2], D, D)
    wl, bl = _linear(keys[3], D, D)
    dw1, db1 = _linear(keys[4], D, 512)
    dw2, db2 = _linear(keys[5], 512, 256)
    dw3, db3 = _linear(keys[6], 256, D)
    wp, bp = _linear(keys[7], D, POSE6D)
    ws, bs = _linear(keys[8], D, NSHAPE)

    enc_fc = {
        "w1_8": jnp.pad(w1, ((0, KPAD - 3), (0, 0))),   # zero-pad K 3 -> 8 for MXU
        "b1": b1,
        "w2_bf": w2.astype(jnp.bfloat16),
        "b2": b2,
    }
    heads = {
        # fc2_mean | fc2_logvar fused into one lane-dense [D, 2D] bf16 weight
        "wml_bf": jnp.concatenate([wm, wl], axis=1).astype(jnp.bfloat16),
        "bml": jnp.concatenate([bm, bl], axis=1),
    }
    pad = HEADS_PAD - POSE6D - NSHAPE
    dec = {
        "w1_bf": dw1.astype(jnp.bfloat16), "b1": db1,
        "w2_bf": dw2.astype(jnp.bfloat16), "b2": db2,
        "w3_bf": dw3.astype(jnp.bfloat16), "b3": db3,
        # pose_reg | shape_reg fused and zero-padded to a lane-dense [D, 128] weight
        "wh_bf": jnp.concatenate(
            [wp, ws, jnp.zeros((D, pad), jnp.float32)], axis=1).astype(jnp.bfloat16),
        "bh": jnp.concatenate([bp, bs, jnp.zeros((1, pad), jnp.float32)], axis=1),
        "g1": jnp.ones((1, 512), jnp.float32), "be1": jnp.zeros((1, 512), jnp.float32),
        "g2": jnp.ones((1, 256), jnp.float32), "be2": jnp.zeros((1, 256), jnp.float32),
        "g3": jnp.ones((1, D), jnp.float32), "be3": jnp.zeros((1, D), jnp.float32),
    }
    return {"enc": {"fc_begin": enc_fc, "heads": heads}, "dec": dec}


if __name__ == "__main__":
    params = init_params(jax.random.PRNGKey(42))
    x = jax.random.normal(jax.random.PRNGKey(0), (2, NPOINTS_PER_LAYER[0], 3),
                          dtype=jnp.float32)
    key = jax.random.PRNGKey(1234)
    pred, mu, logvar, trans = vae_forward(params, x, key)
    jax.block_until_ready((pred["mano_pose"], pred["mano_shape"],
                           pred["mano_pose_aa"], mu, logvar))
    assert mu.shape == (2, NPOINTS_PER_LAYER[-1], D)
    assert logvar.shape == (2, NPOINTS_PER_LAYER[-1], D)
    assert pred["mano_pose"].shape == (2, 16, 3, 3)
    assert pred["mano_shape"].shape == (2, 10)
    assert pred["mano_pose_aa"].shape == (2, 48)
    print("KERNEL_OK")
</pallas_src>

<mosaic_0001>
module attributes {stable_mosaic.version = 11 : i64} {
  func.func @_fc_begin_kernel(%arg0: i32, %arg1: memref<16x8xf32, #tpu.memory_space<vmem>>, %arg2: memref<8x128xf32, #tpu.memory_space<vmem>>, %arg3: memref<1x128xf32, #tpu.memory_space<vmem>>, %arg4: memref<128x128xbf16, #tpu.memory_space<vmem>>, %arg5: memref<1x128xf32, #tpu.memory_space<vmem>>, %arg6: memref<16x128xbf16, #tpu.memory_space<vmem>>) attributes {dimension_semantics = [#tpu.dimension_semantics<parallel>], iteration_bounds = array<i64: 1>, scalar_prefetch = 0 : i64, scratch_operands = 0 : i64, tpu.core_type = #tpu.core_type<tc>, window_params = [{transform_indices = @transform_0, window_bounds = array<i64: 16, 8>}, {pipeline_mode = #tpu.pipeline_mode<synchronous>, transform_indices = @transform_1, window_bounds = array<i64: 8, 128>}, {pipeline_mode = #tpu.pipeline_mode<synchronous>, transform_indices = @transform_2, window_bounds = array<i64: 1, 128>}, {pipeline_mode = #tpu.pipeline_mode<synchronous>, transform_indices = @transform_3, window_bounds = array<i64: 128, 128>}, {pipeline_mode = #tpu.pipeline_mode<synchronous>, transform_indices = @transform_4, window_bounds = array<i64: 1, 128>}, {transform_indices = @transform_5, window_bounds = array<i64: 16, 128>}]} {
    %c0 = arith.constant 0 : index
    %c0_0 = arith.constant 0 : index
    %0 = vector.load %arg1[%c0, %c0_0] : memref<16x8xf32, #tpu.memory_space<vmem>>, vector<16x8xf32>
    %c0_1 = arith.constant 0 : index
    %c0_2 = arith.constant 0 : index
    %1 = vector.load %arg2[%c0_1, %c0_2] : memref<8x128xf32, #tpu.memory_space<vmem>>, vector<8x128xf32>
    %cst = arith.constant dense<0.000000e+00> : vector<16x128xf32>
    %2 = tpu.matmul %0, %1, %cst {dimension_numbers = #tpu.dot_dimension_numbers<[1], [0], [0], [1], [0, 0, 1, 1], [], []>} : vector<16x8xf32>, vector<8x128xf32>, vector<16x128xf32> -> vector<16x128xf32>
    %c0_3 = arith.constant 0 : index
    %c0_4 = arith.constant 0 : index
    %3 = vector.load %arg3[%c0_3, %c0_4] : memref<1x128xf32, #tpu.memory_space<vmem>>, vector<1x128xf32>
    %4 = vector.broadcast %3 : vector<1x128xf32> to vector<16x128xf32>
    %5 = arith.addf %2, %4 : vector<16x128xf32>
    %cst_5 = arith.constant 0.000000e+00 : f32
    %6 = vector.broadcast %cst_5 : f32 to vector<16x128xf32>
    %7 = arith.maximumf %5, %6 : vector<16x128xf32>
    %8 = arith.truncf %7 : vector<16x128xf32> to vector<16x128xbf16>
    %c0_6 = arith.constant 0 : index
    %c0_7 = arith.constant 0 : index
    %9 = vector.load %arg4[%c0_6, %c0_7] : memref<128x128xbf16, #tpu.memory_space<vmem>>, vector<128x128xbf16>
    %cst_8 = arith.constant dense<0.000000e+00> : vector<16x128xf32>
    %10 = tpu.matmul %8, %9, %cst_8 {dimension_numbers = #tpu.dot_dimension_numbers<[1], [0], [0], [1], [0, 0, 1, 1], [], []>} : vector<16x128xbf16>, vector<128x128xbf16>, vector<16x128xf32> -> vector<16x128xf32>
    %c0_9 = arith.constant 0 : index
    %c0_10 = arith.constant 0 : index
    %11 = vector.load %arg5[%c0_9, %c0_10] : memref<1x128xf32, #tpu.memory_space<vmem>>, vector<1x128xf32>
    %12 = vector.broadcast %11 : vector<1x128xf32> to vector<16x128xf32>
    %13 = arith.addf %10, %12 : vector<16x128xf32>
    %14 = arith.truncf %13 : vector<16x128xf32> to vector<16x128xbf16>
    %c0_11 = arith.constant 0 : index
    %c0_12 = arith.constant 0 : index
    %15 = vector.load %arg6[%c0_11, %c0_12] : memref<16x128xbf16, #tpu.memory_space<vmem>>, vector<16x128xbf16>
    tpu.vector_store %arg6[%c0_11, %c0_12], %14 {strides = array<i32>} : memref<16x128xbf16, #tpu.memory_space<vmem>>, vector<16x128xbf16>,
    return
  }
  func.func @transform_0(%arg0: i32) -> (i32, i32) {
    %c0_i32 = arith.constant 0 : i32
    %c0_i32_0 = arith.constant 0 : i32
    return %arg0, %c0_i32 : i32, i32
  }
  func.func @transform_1(%arg0: i32) -> (i32, i32) {
    %c0_i32 = arith.constant 0 : i32
    %c0_i32_0 = arith.constant 0 : i32
    %c0_i32_1 = arith.constant 0 : i32
    return %c0_i32, %c0_i32_0 : i32, i32
  }
  func.func @transform_2(%arg0: i32) -> (i32, i32) {
    %c0_i32 = arith.constant 0 : i32
    %c0_i32_0 = arith.constant 0 : i32
    %c0_i32_1 = arith.constant 0 : i32
    return %c0_i32, %c0_i32_0 : i32, i32
  }
  func.func @transform_3(%arg0: i32) -> (i32, i32) {
    %c0_i32 = arith.constant 0 : i32
    %c0_i32_0 = arith.constant 0 : i32
    %c0_i32_1 = arith.constant 0 : i32
    return %c0_i32, %c0_i32_0 : i32, i32
  }
  func.func @transform_4(%arg0: i32) -> (i32, i32) {
    %c0_i32 = arith.constant 0 : i32
    %c0_i32_0 = arith.constant 0 : i32
    %c0_i32_1 = arith.constant 0 : i32
    return %c0_i32, %c0_i32_0 : i32, i32
  }
  func.func @transform_5(%arg0: i32) -> (i32, i32) {
    %c0_i32 = arith.constant 0 : i32
    %c0_i32_0 = arith.constant 0 : i32
    return %arg0, %c0_i32 : i32, i32
  }
}

</mosaic_0001>

<bundles_post_ra>
// kernel: tpu_custom_call.1
= control target key start
LH: loop header
LB: loop body
LE: loop exit
PB: predicated region body
PF: predicated region fallthrough
CT: control target
= control target key end

     0   :  { %10 = vsyncpa [#allocation3], 0  ;;  %s348_s0 = inlined_call_operand.vmem [shape: f32[16,8], index: 0, kind: input, shape index: {}]   ;;  %s349_s1 = inlined_call_operand.vmem [shape: f32[8,128], index: 1, kind: input, shape index: {}]   ;;  %s350_s2 = inlined_call_operand.vmem [shape: f32[1,128], index: 2, kind: input, shape index: {}]   ;;  %s351_s3 = inlined_call_operand.hbm [shape: bf16[128,128], index: 3, kind: input, shape index: {}]   ;;  %s352_s4 = inlined_call_operand.vmem [shape: f32[1,128], index: 4, kind: input, shape index: {}]   ;;  %s353_s5 = inlined_call_operand.hbm [shape: bf16[16,128], index: 5, kind: output, shape index: {}]  }
   0x1   :  { %11 = vsyncpa [#allocation4], 0  ;;  %s22_s20 = sshll.u32 %s351_s3, 4  ;;  %s287_s21 = smov [#allocation2]   ;;  %s23_s20 = int_to_ptr.hbm [resolvable:$true] %s22_s20 }
   0x2   :  { %s24_s22 = sshll.u32 %s287_s21, 4  ;;  %s288_s23 = smov 64   ;;  %s25_s22 = int_to_ptr.vmem [resolvable:$true] %s24_s22 }
   0x3   :  { %s289_s24 = smov 4  }
   0x4   :  { %30 = dma.hbm_to_vmem [thread:$0]  %s23_s20, 1024, %s25_s22, [#allocation3], %s288_s23, %s288_s23, %s289_s24  }
   0x5   :  { %283 = dma.done.wait [#allocation3], 1024  }
   0x6   :  { %284 = vsyncadd [#allocation3], 4294966272  ;;  %vm44_vm0 = vcmask 64512   ;;  %v39_v0 = vld [vmem:[%s349_s1] sm:$0xff]  ;;  %v223_v2 = vld [vmem:[#allocation2 + $0x38] sm:$0xff]  ;;  %s290_s7 = smov [#allocation5]  }
   0x7   :  { %v37_v1 = vld [vmem:[%s348_s0] sm:$0xff]  ;;  %66 = vmatpush.msra.mxu0 %v39_v0  ;;  %145 = vmatpush.bf16.msra.mxu1 %v223_v2  ;;  %v222_v3 = vld [vmem:[#allocation2 + $0x30] sm:$0xff]  ;;  %v38_v4 = vld [vmem:[%s348_s0 + $0x8] sm:$0xff]  ;;  %s167_s8 = sshll.u32 %s290_s7, 4  ;;  %s169_s11 = sshll.u32 %s353_s5, 4  ;;  %s168_s8 = int_to_ptr.vmem [resolvable:$true] %s167_s8  ;;  %s170_s11 = int_to_ptr.hbm [resolvable:$true] %s169_s11 }
   0x8   :  { %182 = vmatmul.msk.f32.vlgmr.msra.gmra.mxu0 %vm44_vm0, %v37_v1  ;;  %v221_v5 = vld [vmem:[#allocation2 + $0x28] sm:$0xff]  ;;  %v220_v6 = vld [vmem:[#allocation2 + $0x20] sm:$0xff]  ;;  %v219_v7 = vld [vmem:[#allocation2 + $0x18] sm:$0xff] }
   0x9   :  { %v218_v8 = vld [vmem:[#allocation2 + $0x10] sm:$0xff]  ;;  %v217_v9 = vld [vmem:[#allocation2 + $0x8] sm:$0xff]  ;;  %v216_v10 = vld [vmem:[#allocation2] sm:$0xff] }
   0xa   :  { %v233_v12 = vld [vmem:[%s350_s2] ss:$0 sm:$0xff] }
   0xb   :  { %146 = vmatpush.bf16.msra.mxu1 %v222_v3  ;;  %v234_v20 = vld [vmem:[%s352_s4] ss:$0 sm:$0xff] }
   0xf   :  { %147 = vmatpush.bf16.msra.mxu1 %v221_v5 }
  0x10   :  { %183 = vmatmul.msk.f32.gmra.mxu0 %vm44_vm0, %v38_v4 }
  0x13   :  { %148 = vmatpush.bf16.msra.mxu1 %v220_v6 }
  0x17   :  { %149 = vmatpush.bf16.msra.mxu1 %v219_v7 }
  0x1b   :  { %150 = vmatpush.bf16.msra.mxu1 %v218_v8 }
  0x1f   :  { %151 = vmatpush.bf16.msra.mxu1 %v217_v9 }
  0x23   :  { %152 = vmatpush.bf16.msra.mxu1 %v216_v10 }
  0x85   :  { %v68_v11 = vpop.f32.mrf.mxu0 }
  0x86   :  { %v69_v13 = vadd.f32 %v233_v12, %v68_v11 }
  0x88   :  { %v74_v16 = vmax.f32 %v69_v13, 0.0 }
  0x8d   :  { %v71_v14 = vpop.f32.mrf.mxu0 }
  0x8e   :  { %v72_v15 = vadd.f32 %v233_v12, %v71_v14 }
  0x90   :  { %v75_v17 = vmax.f32 %v72_v15, 0.0 }
  0x92   :  { %v76_v18 = vpack.c.bf16 %v75_v17, %v74_v16 }
  0x94   :  { %153 = vmatmul.bf16.vlgmr.msra.gmra.mxu1 %v76_v18 }
 0x111   :  { %v154_v19 = vpop.f32.mrf.mxu1 }
 0x112   :  { %v155_v22 = vadd.f32 %v234_v20, %v154_v19 }
 0x119   :  { %v156_v21 = vpop.f32.mrf.mxu1 }
 0x11a   :  { %v157_v23 = vadd.f32 %v234_v20, %v156_v21 }
 0x11c   :  { %v227_v24 = vpack.c.bf16 %v157_v23, %v155_v22 }
 0x11e   :  { %228 = vst [vmem:[#allocation5] sm:$0xff] %v227_v24  }
 0x11f   :  { %175 = dma.vmem_to_hbm [thread:$0]  %s168_s8, 128, %s170_s11, [#allocation4], %s288_s23, %s288_s23, %s289_s24  }
 0x120   :  { %285 = dma.done.wait [#allocation4], 128  }
 0x121   :  { %286 = vsyncadd [#allocation4], 4294967168 }
 0x122   :  { %180 = vsyncpa [#allocation3], 1 }
 0x123   :  { %181 = vsyncpa [#allocation4], 1 }

</bundles_post_ra>
